<compile_context>
chip_gen: v5e
topology: v5e:2x2
jax: 0.10.0
libtpu: 0.0.40
codegen_flags: <defaults>
</compile_context>

<pallas_src>
import functools

import jax
import jax.numpy as jnp
from jax import lax
from jax.experimental import pallas as pl
from jax.experimental.pallas import tpu as pltpu

_LANE = 128
_MAX_TOKEN_TILE = 256                 # token (sublane) tile cap
_MAX_VOCAB_TILE = 4096                # vocab (lane) tile cap
_MAX_BLOCK_BYTES = 2 * 1024 * 1024    # per logits block (x2 pipeline buffers)


def _choose_tiles(S, V, itemsize):
    """Pick (token_tile, vocab_tile) satisfying the (8, 128) layout rules."""
    # Vocab tile: a large multiple of 128 lanes, or the full vocab when V is
    # not 128-aligned (Mosaic lane-masks the single ragged tile in that case).
    if V % _LANE == 0:
        vt = min(V, _MAX_VOCAB_TILE)
    else:
        vt = V
    # Token tile: multiple of 8 sublanes (or the full S when S < 8), sized so
    # one logits block (in its wire dtype) stays inside the per-buffer byte
    # budget on every TPU generation.
    if S < 8:
        t = S
    else:
        budget_t = max(8, (_MAX_BLOCK_BYTES // (max(vt, 1) * itemsize)) // 8 * 8)
        t = max(8, min(_MAX_TOKEN_TILE, budget_t, (S // 8) * 8))
    return t, vt


def _ce_kernel(logits_ref, labels_ref, loss_ref, m_ref, l_ref, p_ref,
               *, vocab_tile, vocab_size, mask_vocab):
    """Online-LSE cross entropy.  Grid = (batch, token_tile, vocab_tile)."""
    v = pl.program_id(2)
    n_v = pl.num_programs(2)

    @pl.when(v == 0)
    def _init():
        m_ref[...] = jnp.full(m_ref.shape, -jnp.inf, dtype=jnp.float32)
        l_ref[...] = jnp.zeros(l_ref.shape, dtype=jnp.float32)
        p_ref[...] = jnp.zeros(p_ref.shape, dtype=jnp.float32)

    x = logits_ref[0].astype(jnp.float32)    # (T, Vt): cast after DMA (bf16 wire)
    lab = labels_ref[0]                      # (T, 1) int32

    # Global vocab column index of every lane in this tile.
    col = v * vocab_tile + lax.broadcasted_iota(jnp.int32, x.shape, 1)
    if mask_vocab:
        # Last vocab tile may extend past V -> neutralize the padded lanes.
        x = jnp.where(col < vocab_size, x, -jnp.inf)

    # Online log-sum-exp across vocab tiles (flash-style running max / sum).
    m_prev = m_ref[...]
    m_new = jnp.maximum(m_prev, jnp.max(x, axis=-1, keepdims=True))
    l_ref[...] = (l_ref[...] * jnp.exp(m_prev - m_new)
                  + jnp.sum(jnp.exp(x - m_new), axis=-1, keepdims=True))
    m_ref[...] = m_new

    # Logit at the target label (one-hot select; the label falls in exactly
    # one vocab tile, every other tile contributes 0).
    p_ref[...] += jnp.sum(jnp.where(col == lab, x, 0.0), axis=-1, keepdims=True)

    @pl.when(v == n_v - 1)
    def _finalize():
        # Padded / ignored tokens carry label -1 (this also covers token rows
        # past the sequence end in a ragged last token tile, whose logits may
        # be uninitialized VMEM -- the elementwise select discards them).
        # NOTE: every negative label is treated as ignored (torch ignores -100).
        valid = lab >= 0
        lse = m_ref[...] + jnp.log(l_ref[...])
        loss_ref[0] = jnp.where(valid, lse - p_ref[...], 0.0)


@jax.jit
def gpt_lm_loss(logits, labels):
    """Equivalent of GPTLMLoss.forward(logits, labels).

    logits: (B, S, V) float (f32 / bf16 / f16), labels: (B, S) int.
    Returns a scalar float32: mean cross entropy over the shifted tokens.
    """
    B, S, V = logits.shape
    T, Vt = _choose_tiles(S, V, logits.dtype.itemsize)
    n_tt = pl.cdiv(S - 1, T)
    n_vt = pl.cdiv(V, Vt)
    Sp = n_tt * T

    # Shift + pad only the labels (B*S*4 bytes, negligible HBM traffic); the
    # logits enter the kernel untouched in their original dtype and layout.
    shift_labels = labels[:, 1:].astype(jnp.int32)                   # (B, S-1)
    lb = jnp.pad(shift_labels, ((0, 0), (0, Sp - (S - 1))),
                 constant_values=-1)[..., None]                      # (B, Sp, 1)

    kernel = functools.partial(
        _ce_kernel,
        vocab_tile=Vt, vocab_size=V, mask_vocab=(n_vt * Vt != V))

    n_tok = B * (S - 1)
    cost = pl.CostEstimate(
        flops=6 * n_tok * V,
        transcendentals=n_tok * V,
        bytes_accessed=(logits.size * logits.dtype.itemsize
                        + lb.size * 4 + B * Sp * 4))

    per_token = pl.pallas_call(
        kernel,
        out_shape=jax.ShapeDtypeStruct((B, Sp, 1), jnp.float32),
        grid_spec=pltpu.PrefetchScalarGridSpec(
            num_scalar_prefetch=0,
            grid=(B, n_tt, n_vt),
            in_specs=[
                pl.BlockSpec((1, T, Vt), lambda b, t, v: (b, t, v)),  # logits
                pl.BlockSpec((1, T, 1), lambda b, t, v: (b, t, 0)),   # labels
            ],
            out_specs=pl.BlockSpec((1, T, 1), lambda b, t, v: (b, t, 0)),
            scratch_shapes=[
                pltpu.VMEM((T, 1), jnp.float32),  # running max
                pltpu.VMEM((T, 1), jnp.float32),  # running sum of exp
                pltpu.VMEM((T, 1), jnp.float32),  # picked (label) logit
            ],
        ),
        compiler_params=pltpu.CompilerParams(
            dimension_semantics=("parallel", "parallel", "arbitrary"),
            vmem_limit_bytes=32 * 1024 * 1024),
        cost_estimate=cost,
    )(logits, lb)

    # Tiny final reduction in the wrapper: tree-sum is more accurate than a
    # serial in-kernel scalar accumulation and keeps the grid fully parallel.
    valid_cnt = jnp.sum((shift_labels >= 0).astype(jnp.float32))
    return jnp.sum(per_token) / valid_cnt


def _reference_loss(logits, labels):
    """Pure-JAX reference matching torch.nn.CrossEntropyLoss on shifted tokens."""
    V = logits.shape[-1]
    sl = logits[:, :-1, :].reshape(-1, V).astype(jnp.float32)
    lb = labels[:, 1:].reshape(-1).astype(jnp.int32)
    logp = jax.nn.log_softmax(sl, axis=-1)
    picked = jnp.take_along_axis(logp, jnp.maximum(lb, 0)[:, None], axis=-1)[:, 0]
    valid = lb >= 0
    return -(jnp.sum(jnp.where(valid, picked, 0.0)) / jnp.sum(valid))


if __name__ == "__main__":
    key = jax.random.PRNGKey(0)
    k1, k2, k3, k4 = jax.random.split(key, 4)

    # Small f32 case (module's default usage).
    B, S, V = 2, 8, 32
    logits = jax.random.normal(k1, (B, S, V), dtype=jnp.float32)
    labels = jax.random.randint(k2, (B, S), 0, V, dtype=jnp.int32)
    loss = gpt_lm_loss(logits, labels)
    jax.block_until_ready(loss)
    ref = _reference_loss(logits, labels)
    assert jnp.allclose(loss, ref, rtol=1e-5, atol=1e-5), (loss, ref)

    # bf16 logits on the wire + ragged token edge (S-1 not a tile multiple).
    B2, S2, V2 = 2, 20, 384
    logits2 = jax.random.normal(k3, (B2, S2, V2), dtype=jnp.bfloat16)
    labels2 = jax.random.randint(k4, (B2, S2), 0, V2, dtype=jnp.int32)
    loss2 = gpt_lm_loss(logits2, labels2)
    jax.block_until_ready(loss2)
    ref2 = _reference_loss(logits2.astype(jnp.float32), labels2)
    assert jnp.allclose(loss2, ref2, rtol=1e-4, atol=1e-4), (loss2, ref2)

    print("KERNEL_OK")
</pallas_src>

<mosaic_0001>
module attributes {stable_mosaic.version = 11 : i64} {
  func.func @_ce_kernel(%arg0: i32, %arg1: i32, %arg2: i32, %arg3: memref<1x8x32xf32, #tpu.memory_space<vmem>>, %arg4: memref<1x8x1xi32, #tpu.memory_space<vmem>>, %arg5: memref<1x8x1xf32, #tpu.memory_space<vmem>>, %arg6: memref<8x1xf32, #tpu.memory_space<vmem>>, %arg7: memref<8x1xf32, #tpu.memory_space<vmem>>, %arg8: memref<8x1xf32, #tpu.memory_space<vmem>>) attributes {dimension_semantics = [#tpu.dimension_semantics<parallel>, #tpu.dimension_semantics<parallel>, #tpu.dimension_semantics<arbitrary>], iteration_bounds = array<i64: 2, 1, 1>, scalar_prefetch = 0 : i64, scratch_operands = 3 : i64, tpu.core_type = #tpu.core_type<tc>, window_params = [{transform_indices = @transform_0, window_bounds = array<i64: 1, 8, 32>}, {transform_indices = @transform_1, window_bounds = array<i64: 1, 8, 1>}, {transform_indices = @transform_2, window_bounds = array<i64: 1, 8, 1>}]} {
    %c0_i32 = arith.constant 0 : i32
    %0 = arith.cmpi eq, %arg2, %c0_i32 : i32
    %1 = arith.extui %0 : i1 to i32
    %c0_i32_0 = arith.constant 0 : i32
    %2 = arith.cmpi ne, %1, %c0_i32_0 : i32
    scf.if %2 {
      %cst_23 = arith.constant 0xFF800000 : f32
      %39 = vector.broadcast %cst_23 : f32 to vector<8x1xf32>
      %c0_24 = arith.constant 0 : index
      %c0_25 = arith.constant 0 : index
      %40 = vector.load %arg6[%c0_24, %c0_25] : memref<8x1xf32, #tpu.memory_space<vmem>>, vector<8x1xf32>
      tpu.vector_store %arg6[%c0_24, %c0_25], %39 {strides = array<i32>} : memref<8x1xf32, #tpu.memory_space<vmem>>, vector<8x1xf32>,
      %cst_26 = arith.constant 0.000000e+00 : f32
      %41 = vector.broadcast %cst_26 : f32 to vector<8x1xf32>
      %c0_27 = arith.constant 0 : index
      %c0_28 = arith.constant 0 : index
      %42 = vector.load %arg7[%c0_27, %c0_28] : memref<8x1xf32, #tpu.memory_space<vmem>>, vector<8x1xf32>
      tpu.vector_store %arg7[%c0_27, %c0_28], %41 {strides = array<i32>} : memref<8x1xf32, #tpu.memory_space<vmem>>, vector<8x1xf32>,
      %cst_29 = arith.constant 0.000000e+00 : f32
      %43 = vector.broadcast %cst_29 : f32 to vector<8x1xf32>
      %c0_30 = arith.constant 0 : index
      %c0_31 = arith.constant 0 : index
      %44 = vector.load %arg8[%c0_30, %c0_31] : memref<8x1xf32, #tpu.memory_space<vmem>>, vector<8x1xf32>
      tpu.vector_store %arg8[%c0_30, %c0_31], %43 {strides = array<i32>} : memref<8x1xf32, #tpu.memory_space<vmem>>, vector<8x1xf32>,
    } else {
    }
    %c0 = arith.constant 0 : index
    %c0_1 = arith.constant 0 : index
    %c0_2 = arith.constant 0 : index
    %3 = vector.load %arg3[%c0, %c0_1, %c0_2] : memref<1x8x32xf32, #tpu.memory_space<vmem>>, vector<1x8x32xf32>
    %4 = vector.shape_cast %3 : vector<1x8x32xf32> to vector<8x32xf32>
    %c0_3 = arith.constant 0 : index
    %c0_4 = arith.constant 0 : index
    %c0_5 = arith.constant 0 : index
    %5 = vector.load %arg4[%c0_3, %c0_4, %c0_5] : memref<1x8x1xi32, #tpu.memory_space<vmem>>, vector<1x8x1xi32>
    %6 = vector.shape_cast %5 : vector<1x8x1xi32> to vector<8x1xi32>
    %c32_i32 = arith.constant 32 : i32
    %7 = arith.muli %arg2, %c32_i32 : i32
    %8 = tpu.iota {dimensions = array<i32: 1>} : vector<8x32xi32>
    %9 = vector.broadcast %7 : i32 to vector<8x32xi32>
    %10 = arith.addi %9, %8 : vector<8x32xi32>
    %c0_6 = arith.constant 0 : index
    %c0_7 = arith.constant 0 : index
    %11 = vector.load %arg6[%c0_6, %c0_7] : memref<8x1xf32, #tpu.memory_space<vmem>>, vector<8x1xf32>
    %cst = arith.constant dense<0xFF800000> : vector<8xf32>
    %12 = vector.multi_reduction <maximumf>, %4, %cst [1] : vector<8x32xf32> to vector<8xf32>
    %13 = vector.shape_cast %12 : vector<8xf32> to vector<8x1xf32>
    %14 = arith.maximumf %11, %13 : vector<8x1xf32>
    %c0_8 = arith.constant 0 : index
    %c0_9 = arith.constant 0 : index
    %15 = vector.load %arg7[%c0_8, %c0_9] : memref<8x1xf32, #tpu.memory_space<vmem>>, vector<8x1xf32>
    %16 = arith.subf %11, %14 : vector<8x1xf32>
    %17 = math.exp %16 : vector<8x1xf32>
    %18 = arith.mulf %15, %17 : vector<8x1xf32>
    %19 = vector.broadcast %14 : vector<8x1xf32> to vector<8x32xf32>
    %20 = arith.subf %4, %19 : vector<8x32xf32>
    %21 = math.exp %20 : vector<8x32xf32>
    %cst_10 = arith.constant dense<0.000000e+00> : vector<8xf32>
    %22 = vector.multi_reduction <add>, %21, %cst_10 [1] : vector<8x32xf32> to vector<8xf32>
    %23 = vector.shape_cast %22 : vector<8xf32> to vector<8x1xf32>
    %24 = arith.addf %18, %23 : vector<8x1xf32>
    %c0_11 = arith.constant 0 : index
    %c0_12 = arith.constant 0 : index
    %25 = vector.load %arg7[%c0_11, %c0_12] : memref<8x1xf32, #tpu.memory_space<vmem>>, vector<8x1xf32>
    tpu.vector_store %arg7[%c0_11, %c0_12], %24 {strides = array<i32>} : memref<8x1xf32, #tpu.memory_space<vmem>>, vector<8x1xf32>,
    %c0_13 = arith.constant 0 : index
    %c0_14 = arith.constant 0 : index
    %26 = vector.load %arg6[%c0_13, %c0_14] : memref<8x1xf32, #tpu.memory_space<vmem>>, vector<8x1xf32>
    tpu.vector_store %arg6[%c0_13, %c0_14], %14 {strides = array<i32>} : memref<8x1xf32, #tpu.memory_space<vmem>>, vector<8x1xf32>,
    %c0_15 = arith.constant 0 : index
    %c0_16 = arith.constant 0 : index
    %27 = vector.load %arg8[%c0_15, %c0_16] : memref<8x1xf32, #tpu.memory_space<vmem>>, vector<8x1xf32>
    %28 = vector.broadcast %6 : vector<8x1xi32> to vector<8x32xi32>
    %29 = arith.cmpi eq, %10, %28 : vector<8x32xi32>
    %cst_17 = arith.constant 0.000000e+00 : f32
    %30 = vector.broadcast %cst_17 : f32 to vector<8x32xf32>
    %31 = arith.select %29, %4, %30 : vector<8x32xi1>, vector<8x32xf32>
    %cst_18 = arith.constant dense<0.000000e+00> : vector<8xf32>
    %32 = vector.multi_reduction <add>, %31, %cst_18 [1] : vector<8x32xf32> to vector<8xf32>
    %33 = vector.shape_cast %32 : vector<8xf32> to vector<8x1xf32>
    %34 = arith.addf %27, %33 : vector<8x1xf32>
    %c0_19 = arith.constant 0 : index
    %c0_20 = arith.constant 0 : index
    %35 = vector.load %arg8[%c0_19, %c0_20] : memref<8x1xf32, #tpu.memory_space<vmem>>, vector<8x1xf32>
    tpu.vector_store %arg8[%c0_19, %c0_20], %34 {strides = array<i32>} : memref<8x1xf32, #tpu.memory_space<vmem>>, vector<8x1xf32>,
    %c0_i32_21 = arith.constant 0 : i32
    %36 = arith.cmpi eq, %arg2, %c0_i32_21 : i32
    %37 = arith.extui %36 : i1 to i32
    %c0_i32_22 = arith.constant 0 : i32
    %38 = arith.cmpi ne, %37, %c0_i32_22 : i32
    scf.if %38 {
      %c0_i32_23 = arith.constant 0 : i32
      %39 = vector.broadcast %c0_i32_23 : i32 to vector<8x1xi32>
      %40 = arith.cmpi sge, %6, %39 : vector<8x1xi32>
      %c0_24 = arith.constant 0 : index
      %c0_25 = arith.constant 0 : index
      %41 = vector.load %arg6[%c0_24, %c0_25] : memref<8x1xf32, #tpu.memory_space<vmem>>, vector<8x1xf32>
      %c0_26 = arith.constant 0 : index
      %c0_27 = arith.constant 0 : index
      %42 = vector.load %arg7[%c0_26, %c0_27] : memref<8x1xf32, #tpu.memory_space<vmem>>, vector<8x1xf32>
      %43 = math.log %42 : vector<8x1xf32>
      %44 = arith.addf %41, %43 : vector<8x1xf32>
      %c0_28 = arith.constant 0 : index
      %c0_29 = arith.constant 0 : index
      %45 = vector.load %arg8[%c0_28, %c0_29] : memref<8x1xf32, #tpu.memory_space<vmem>>, vector<8x1xf32>
      %46 = arith.subf %44, %45 : vector<8x1xf32>
      %cst_30 = arith.constant 0.000000e+00 : f32
      %47 = vector.broadcast %cst_30 : f32 to vector<8x1xf32>
      %48 = arith.select %40, %46, %47 : vector<8x1xi1>, vector<8x1xf32>
      %c0_31 = arith.constant 0 : index
      %c0_32 = arith.constant 0 : index
      %c0_33 = arith.constant 0 : index
      %49 = vector.load %arg5[%c0_31, %c0_32, %c0_33] : memref<1x8x1xf32, #tpu.memory_space<vmem>>, vector<1x8x1xf32>
      %50 = vector.shape_cast %49 : vector<1x8x1xf32> to vector<8x1xf32>
      %51 = vector.shape_cast %48 : vector<8x1xf32> to vector<1x8x1xf32>
      tpu.vector_store %arg5[%c0_31, %c0_32, %c0_33], %51 {strides = array<i32>} : memref<1x8x1xf32, #tpu.memory_space<vmem>>, vector<1x8x1xf32>,
    } else {
    }
    return
  }
  func.func @transform_0(%arg0: i32, %arg1: i32, %arg2: i32) -> (i32, i32, i32) {
    %c0_i32 = arith.constant 0 : i32
    return %arg0, %arg1, %arg2 : i32, i32, i32
  }
  func.func @transform_1(%arg0: i32, %arg1: i32, %arg2: i32) -> (i32, i32, i32) {
    %c0_i32 = arith.constant 0 : i32
    %c0_i32_0 = arith.constant 0 : i32
    return %arg0, %arg1, %c0_i32 : i32, i32, i32
  }
  func.func @transform_2(%arg0: i32, %arg1: i32, %arg2: i32) -> (i32, i32, i32) {
    %c0_i32 = arith.constant 0 : i32
    %c0_i32_0 = arith.constant 0 : i32
    return %arg0, %arg1, %c0_i32 : i32, i32, i32
  }
}

</mosaic_0001>

<bundles_post_ra>
// kernel: gpt_lm_loss.1
= control target key start
LH: loop header
LB: loop body
LE: loop exit
PB: predicated region body
PF: predicated region fallthrough
CT: control target
= control target key end

     0   :  { %s463_s9 = smov 0   ;;  %s465_s10 = smov 0   ;;  %s514_s0 = inlined_call_operand.vmem [shape: f32[2,8,32], index: 0, kind: input, shape index: {}]   ;;  %s515_s1 = inlined_call_operand.vmem [shape: s32[2,8,1], index: 1, kind: input, shape index: {}]   ;;  %s516_s2 = inlined_call_operand.vmem [shape: f32[2,8,1], index: 2, kind: output, shape index: {}]  }
   0x1   :  { %s467_s11 = smov 0  }
   0x2 LB: > { %s31_s12 = sadd.s32 1, %s439_s10  ;;  %p380_p0 = scmp.ge.s32.totalorder %s443_s11, 1  ;;  %s443_s11 = sphi %s467_s11, %s12_s11   ;;  %s439_s10 = sphi %s465_s10, %s518_s10   ;;  %s435_s9 = sphi %s463_s9, %s517_s9  }
   0x3   : > { %p33_p1 = scmp.ge.s32.totalorder %s31_s12, 2  ;;  %p156_p2 = scmp.lt.s32.totalorder %s443_s11, 3 }
   0x5   : > { %s520_s12 = smov (%p33_p1, %s31_s12), 0  ;;  %p157_p3 = pnand %p380_p0, %p156_p2 }
   0x6   : > { %p192_p4 = scmp.lt.s32.totalorder (!%p157_p3), %s435_s9, 1 }
   0x7   : > { %160 = sbr.rel (%p157_p3) target bundleno = 403 (0x193), region = 28 }
   0xc   : > { %vm220_vm0 = vcmask 7168   ;;  %v445_v0 = vmov -inf   ;;  %s522_s9 = smov (!%p192_p4, %s435_s9), 1  ;;  %vm232_vm1 = vcmask 261120   ;;  %v446_v3 = vmov 0  }
   0xd   : > { %221 = vst.msk [vmem:[#allocation2] sm:$0xff] %vm220_vm0, %v445_v0  ;;  %s482_s13 = sshll.u32 %s522_s9, 3  ;;  %413 = vset.pattern.permute.xlu0 %v446_v3  ;;  %414 = vset.pattern.permute.xlu1 %v446_v3  ;;  %v447_v4 = vmov 0.0   ;;  %v227_v10 = vlaneseq }
   0xe   : > { %s201_s16 = scalar_lea.vmem %s514_s0, %s482_s13  ;;  %222 = vst.msk [vmem:[#allocation3] sm:$0xff] %vm220_vm0, %v447_v4  ;;  %s208_s19 = scalar_lea.vmem %s515_s1, %s482_s13 }
   0xf   : > { %v224_v1 = vld [vmem:[%s201_s16] sm:$0xff]  ;;  %223 = vst.msk [vmem:[#allocation4] sm:$0xff] %vm220_vm0, %v447_v4  ;;  %v228_v12 = vand.u32 127, %v227_v10  ;;  %s215_s22 = scalar_lea.vmem %s516_s2, %s482_s13 }
  0x10   : > { %v233_v2 = vsel %vm232_vm1, %v224_v1, -inf  ;;  %v225_v5 = vld [vmem:[%s208_s19] sm:$0xff] }
  0x11   : > { %234 = vmax.xlane.f32.xlu0 %v233_v2  ;;  %259 = vperm.xlu1 %414, %v225_v5   ;;  %vm271_vm3 = vcmp.ge.s32.totalorder %v225_v5, 0 }
  0x14   : > { %v231_v6 = vld [vmem:[#allocation2] sm:$0xff] }
  0x15   : > { %v237_v25 = vld [vmem:[#allocation3] sm:$0xff] }
  0x16   : > { %v257_v20 = vld [vmem:[#allocation4] sm:$0xff] }
  0x83   : > { %v260_v11 = vpop.permute.xlu1 %259 }
  0x84   : > { %v235_v7 = vpop.xlane.xlu0 %234  ;;  %vm261_vm2 = vcmp.eq.s32.totalorder %v228_v12, %v260_v11 }
  0x85   : > { %v236_v8 = vmax.f32 %v231_v6, %v235_v7  ;;  %v262_v13 = vsel %vm261_vm2, %v224_v1, 0.0 }
  0x86   : > { %v263_v14 = vsel %vm232_vm1, %v262_v13, 0.0 }
  0x87   : > { %v238_v9 = vsub.f32 %v231_v6, %v236_v8  ;;  %256 = vst.msk [vmem:[#allocation2] sm:$0xff] %vm220_vm0, %v236_v8  ;;  %244 = vperm.xlu0 %413, %v236_v8   ;;  %264 = vadd.xlane.f32.xlu2 %v263_v14 }
  0x89   : > { %v239_v23 = vmul.f32 1.442695, %v238_v9 }
  0x8e   : > { %v272_v32 = vld [vmem:[#allocation2] sm:$0xff] }
  0xf9   : > { %v245_v15 = vpop.permute.xlu0 %244 }
  0xfa   : > { %v247_v16 = vsub.f32 %v224_v1, %v245_v15  ;;  %v265_v21 = vpop.xlane.xlu2 %264 }
  0xfb   : > { %v266_v22 = vadd.f32 %v265_v21, %v257_v20 }
  0xfc   : > { %v248_v17 = vmul.f32 1.442695, %v247_v16 }
  0xfd   : > { %267 = vst.msk [vmem:[#allocation4] sm:$0xff] %vm220_vm0, %v266_v22 }
  0xfe   : > { %415 = vpow2.f32 %v248_v17 }
  0xff   : > { %417 = vpow2.f32 %v239_v23 }
 0x104   : > { %v416_v18 = vpop.eup %415  ;;  %v277_v33 = vld [vmem:[#allocation4] sm:$0xff] }
 0x105   : > { %v250_v19 = vsel %vm232_vm1, %v416_v18, 0.0  ;;  %v418_v24 = vpop.eup %417 }
 0x106   : > { %251 = vadd.xlane.f32.xlu1 %v250_v19  ;;  %v241_v26 = vmul.f32 %v418_v24, %v237_v25 }
 0x179   : > { %v252_v27 = vpop.xlane.xlu1 %251 }
 0x17a   : > { %v253_v28 = vadd.f32 %v252_v27, %v241_v26 }
 0x17c   : > { %255 = vst.msk [vmem:[#allocation3] sm:$0xff] %vm220_vm0, %v253_v28 }
 0x183   : > { %v273_v29 = vld [vmem:[#allocation3] sm:$0xff] }
 0x184   : > { %419 = vlog2.f32 %v273_v29 }
 0x18a   : > { %v420_v30 = vpop.eup %419 }
 0x18b   : > { %v275_v31 = vmul.f32 0.6931472, %v420_v30 }
 0x18d   : > { %v276_v34 = vadd.f32 %v275_v31, %v272_v32 }
 0x18f   : > { %v278_v35 = vsub.f32 %v276_v34, %v277_v33 }
 0x191   : > { %v279_v36 = vsel %vm271_vm3, %v278_v35, 0.0 }
 0x192   : > { %280 = vst.msk [vmem:[%s215_s22] sm:$0xff] %vm220_vm0, %v279_v36 }
 0x193 PF: > { %s12_s11 = sadd.s32 1, %s443_s11   ;;  %s517_s9 = smov %s439_s10 }
 0x194   : > { %p9_p5 = scmp.ge.s32.totalorder %s12_s11, 4   ;;  %s518_s10 = smov %s520_s12 }
 0x196   :  { %11 = sbr.rel (!%p9_p5) target bundleno = 2 (0x2), region = 69 }

</bundles_post_ra>
